<compile_context>
chip_gen: v6e
topology: v6e:2x2x1
jax: 0.10.0
libtpu: 0.0.40
codegen_flags: <defaults>
</compile_context>

<pallas_src>
import functools

import jax
import jax.numpy as jnp
from jax.experimental import pallas as pl
from jax.experimental.pallas import tpu as pltpu

_LANE = 128             # vreg lane width (last dim)
_MAX_TILE_ROWS = 4096   # 4096 x 128 x 4B = 2 MiB per f32 block
_SPLIT_ROWS = 1024      # mid-size inputs >= 2*this get split into 2 grid steps


def _round_up(a, m):
    return ((a + m - 1) // m) * m


def _sublane_multiple(dtype):
    # Row-tiling requirement: (8,128) f32, (16,128) 16-bit, (32,128) 8-bit.
    return {4: 8, 2: 16, 1: 32}.get(jnp.dtype(dtype).itemsize, 8)


def _scale_kernel(x_ref, o_ref, *, scale):
    # Pure elementwise multiply on a lane-dense (tile_rows, 128) block.
    # Compute in f32 so integer (uint8 frame) inputs scale correctly.
    o_ref[...] = (x_ref[...].astype(jnp.float32) * scale).astype(o_ref.dtype)


def scale_forward(x, scale, *, max_tile_rows=_MAX_TILE_ROWS,
                  min_pallas_bytes=256 * 1024):
    """Pallas implementation of Scale.forward: returns x * scale.

    Float inputs keep their dtype; integer inputs return float32.
    """
    x = jnp.asarray(x)
    orig_shape = x.shape
    scale = float(scale)
    out_dtype = x.dtype if jnp.issubdtype(x.dtype, jnp.floating) else jnp.float32
    n = x.size

    # Fast path: tiny tensors (the actual DQN case) -- a pallas_call launch plus
    # layout plumbing costs more than letting XLA fuse a single multiply.
    if n == 0 or n * x.dtype.itemsize < min_pallas_bytes:
        return x.astype(out_dtype) * scale

    # --- lane-dense layout: flatten to (rows, 128), rows padded only to the
    # dtype sublane multiple (at most ~4 KiB of padding). ---
    sub = _sublane_multiple(x.dtype)
    rows = _round_up(pl.cdiv(n, _LANE), sub)
    padded = rows * _LANE

    xf = x.reshape(-1)
    needs_pad = padded != n
    if needs_pad:
        xf = jnp.pad(xf, (0, padded - n))
    x2 = xf.reshape(rows, _LANE)

    # --- tile selection: big blocks (amortize per-step overhead), but make sure
    # mid/large inputs get >=2 grid steps so both v7x TensorCores have work. ---
    if rows > max_tile_rows:
        tile_rows = max_tile_rows                       # many steps
    elif rows >= 2 * _SPLIT_ROWS:
        tile_rows = _round_up(pl.cdiv(rows, 2), sub)    # exactly 2 steps
    else:
        tile_rows = rows                                # single step, small input
    grid = (pl.cdiv(rows, tile_rows),)                  # partial last block OK

    cost = pl.CostEstimate(
        flops=n,
        transcendentals=0,
        bytes_accessed=n * (jnp.dtype(x.dtype).itemsize
                            + jnp.dtype(out_dtype).itemsize),
    )

    out2 = pl.pallas_call(
        functools.partial(_scale_kernel, scale=scale),
        out_shape=jax.ShapeDtypeStruct((rows, _LANE), out_dtype),
        grid_spec=pltpu.PrefetchScalarGridSpec(
            num_scalar_prefetch=0,
            grid=grid,
            in_specs=[pl.BlockSpec((tile_rows, _LANE), lambda i: (i, 0))],
            out_specs=pl.BlockSpec((tile_rows, _LANE), lambda i: (i, 0)),
        ),
        compiler_params=pltpu.CompilerParams(
            dimension_semantics=("parallel",)),
        cost_estimate=cost,
    )(x2)

    out_flat = out2.reshape(-1)
    if needs_pad:
        out_flat = out_flat[:n]
    return out_flat.reshape(orig_shape)


if __name__ == "__main__":
    key = jax.random.PRNGKey(0)
    k0, k1, k2 = jax.random.split(key, 3)
    scale = 1.0 / 255.0

    # 1) Small Atari-style input (batch=2, channels=4, 16x16) -- default path
    #    (tiny tensor => fused XLA multiply).
    x_small = jax.random.uniform(k0, (2, 4, 16, 16), jnp.float32,
                                 minval=0.0, maxval=255.0)
    out_small = jax.block_until_ready(scale_forward(x_small, scale))
    assert out_small.shape == x_small.shape and out_small.dtype == x_small.dtype
    assert bool(jnp.allclose(out_small, x_small * scale, rtol=1e-6, atol=1e-6))

    # 2) Same small input forced through the Pallas kernel (no padding needed).
    out_small_pl = jax.block_until_ready(
        scale_forward(x_small, scale, min_pallas_bytes=0))
    assert bool(jnp.allclose(out_small_pl, x_small * scale, rtol=1e-6, atol=1e-6))

    # 3) Ragged uint8 frames (2,4,84,84): in-kernel u8->f32 cast + tail padding.
    x_u8 = jax.random.randint(k1, (2, 4, 84, 84), 0, 256, jnp.int32).astype(jnp.uint8)
    out_u8 = jax.block_until_ready(scale_forward(x_u8, scale, min_pallas_bytes=0))
    assert out_u8.dtype == jnp.float32 and out_u8.shape == x_u8.shape
    assert bool(jnp.allclose(out_u8, x_u8.astype(jnp.float32) * scale,
                             rtol=1e-6, atol=1e-6))

    # 4) Larger f32 input (1024x1024 = 4 MiB): multi-step grid, big blocks.
    x_big = jax.random.normal(k2, (1024, 1024), jnp.float32)
    out_big = jax.block_until_ready(scale_forward(x_big, 2.5))
    assert bool(jnp.allclose(out_big, x_big * 2.5, rtol=1e-6, atol=1e-6))

    print("KERNEL_OK")
</pallas_src>

<mosaic_0001>
module attributes {stable_mosaic.version = 11 : i64} {
  func.func @_scale_kernel(%arg0: i32, %arg1: memref<16x128xf32, #tpu.memory_space<vmem>>, %arg2: memref<16x128xf32, #tpu.memory_space<vmem>>) attributes {dimension_semantics = [#tpu.dimension_semantics<parallel>], iteration_bounds = array<i64: 1>, scalar_prefetch = 0 : i64, scratch_operands = 0 : i64, tpu.core_type = #tpu.core_type<tc>, window_params = [{transform_indices = @transform_0, window_bounds = array<i64: 16, 128>}, {transform_indices = @transform_1, window_bounds = array<i64: 16, 128>}]} {
    %c0 = arith.constant 0 : index
    %c0_0 = arith.constant 0 : index
    %0 = vector.load %arg1[%c0, %c0_0] : memref<16x128xf32, #tpu.memory_space<vmem>>, vector<16x128xf32>
    %cst = arith.constant 0.00392156886 : f32
    %1 = vector.broadcast %cst : f32 to vector<16x128xf32>
    %2 = arith.mulf %0, %1 : vector<16x128xf32>
    %c0_1 = arith.constant 0 : index
    %c0_2 = arith.constant 0 : index
    %3 = vector.load %arg2[%c0_1, %c0_2] : memref<16x128xf32, #tpu.memory_space<vmem>>, vector<16x128xf32>
    tpu.vector_store %arg2[%c0_1, %c0_2], %2 {strides = array<i32>} : memref<16x128xf32, #tpu.memory_space<vmem>>, vector<16x128xf32>,
    return
  }
  func.func @transform_0(%arg0: i32) -> (i32, i32) {
    %c0_i32 = arith.constant 0 : i32
    %c0_i32_0 = arith.constant 0 : i32
    return %arg0, %c0_i32 : i32, i32
  }
  func.func @transform_1(%arg0: i32) -> (i32, i32) {
    %c0_i32 = arith.constant 0 : i32
    %c0_i32_0 = arith.constant 0 : i32
    return %arg0, %c0_i32 : i32, i32
  }
}

</mosaic_0001>

<bundles_post_ra>
// kernel: tpu_custom_call.1
= control target key start
LH: loop header
LB: loop body
LE: loop exit
PB: predicated region body
PF: predicated region fallthrough
CT: control target
= control target key end

     0   :  { %6 = vsyncpa [#allocation3], 0  ;;  %s114_s0 = inlined_call_operand.hbm [shape: f32[16,128], index: 0, kind: input, shape index: {}]   ;;  %s115_s1 = inlined_call_operand.hbm [shape: f32[16,128], index: 1, kind: output, shape index: {}]  }
   0x1   :  { %7 = vsyncpa [#allocation4], 0  ;;  %s94_s6 = smov [#allocation2]  }
   0x2   :  { %s13_s7 = sshll.u32 %s94_s6, 4  ;;  %s14_s7 = int_to_ptr.vmem [resolvable:$true] %s13_s7 }
   0x3   :  { %s58_s8 = scalar_lea.vmem %s14_s7, 256  ;;  %p63_p1 = scmp.lt.s32.totalorder %s14_s7, %s14_s7 }
   0x4   :  { %p59_p0 = scmp.ne.s32.totalorder %s14_s7, %s58_s8  ;;  %p64_p2 = scmp.lt.s32.totalorder %s58_s8, %s58_s8 }
   0x6   :  { %p65_p3 = por %p64_p2, %p63_p1 }
   0x8   :  { %p66_p4 = pnand %p65_p3, %p59_p0 }
   0xa   :  { %69 = shalt.err (!%p66_p4)
}
   0xb   :  { %s95_s9 = smov 128   ;;  %s96_s10 = smov 8  }
   0xc   :  { %19 = dma.hbm_to_vmem [thread:$0]  %s114_s0, 256, %s14_s7, [#allocation3], %s95_s9, %s95_s9, %s96_s10  }
   0xd   :  { %90 = dma.done.wait [#allocation3], 256  }
   0xe   :  { %91 = vsyncadd [#allocation3], 4294967040  ;;  %s97_s13 = smov [#allocation5]   ;;  %v23_v0 = vld [vmem:[#allocation2] sm:$0xff]  ;;  %v24_v1 = vld [vmem:[#allocation2 + $0x8] sm:$0xff] }
   0xf   :  { %s34_s14 = sshll.u32 %s97_s13, 4  ;;  %v25_v2 = vmul.f32 0.003921569, %v23_v0  ;;  %v26_v3 = vmul.f32 0.003921569, %v24_v1  ;;  %s35_s14 = int_to_ptr.vmem [resolvable:$true] %s34_s14 }
  0x10   :  { %s70_s15 = scalar_lea.vmem %s35_s14, 256  ;;  %p75_p6 = scmp.lt.s32.totalorder %s35_s14, %s35_s14 }
  0x11   :  { %27 = vst [vmem:[#allocation5] sm:$0xff] %v25_v2  ;;  %28 = vst [vmem:[#allocation5 + $0x8] sm:$0xff] %v26_v3  ;;  %p71_p5 = scmp.ne.s32.totalorder %s35_s14, %s70_s15  ;;  %p76_p7 = scmp.lt.s32.totalorder %s70_s15, %s70_s15 }
  0x13   :  { %p77_p8 = por %p76_p7, %p75_p6 }
  0x15   :  { %p78_p9 = pnand %p77_p8, %p71_p5 }
  0x17   :  { %81 = shalt.err (!%p78_p9)
}
  0x18   :  { %40 = dma.vmem_to_hbm [thread:$0]  %s35_s14, 256, %s115_s1, [#allocation4], %s95_s9, %s95_s9, %s96_s10  }
  0x19   :  { %92 = dma.done.wait [#allocation4], 256  }
  0x1a   :  { %93 = vsyncadd [#allocation4], 4294967040 }
  0x1b   :  { %44 = vsyncpa [#allocation3], 1 }
  0x1c   :  { %45 = vsyncpa [#allocation4], 1 }

</bundles_post_ra>
